<compile_context>
chip_gen: v6e
topology: v6e:2x2x1
jax: 0.10.0
libtpu: 0.0.40
codegen_flags: <defaults>
</compile_context>

<pallas_src>
import jax
import jax.numpy as jnp
from jax.experimental import pallas as pl
from jax.experimental.pallas import tpu as pltpu


def _softplus(v):
    # numerically stable softplus shared by the BCE and entropy branches
    return jnp.maximum(v, 0.0) + jnp.log1p(jnp.exp(-jnp.abs(v)))


def _criterion_kernel(scal_ref, logits_ref, t_mu_ref, s_mu_ref,
                      t_lvar_ref, s_lvar_ref, out_ref):
    i = pl.program_id(0)

    # out_ref is the (4,) SMEM accumulator: [tot, L_t, lam_e*L_e, lam_od*(L_zt+L_zs)]
    @pl.when(i == 0)
    def _init():
        out_ref[0] = 0.0
        out_ref[1] = 0.0
        out_ref[2] = 0.0
        out_ref[3] = 0.0

    # host-precombined coefficients:
    #   c_t  = 1 / B
    #   c_e  = 0.5 * lambda_e / B              ((ent/2).mean() * lambda_e)
    #   c_od = -0.5 * lambda_od / (B * D)      (KLD mean * lambda_od)
    c_t = scal_ref[0]
    c_e = scal_ref[1]
    c_od = scal_ref[2]

    # lane-dense packed logits tile (3, TB): rows = (zt_y, target, zt_s)
    x = logits_ref[0:1, :]          # zt_y logits
    y = logits_ref[1:2, :]          # BCE targets
    z = logits_ref[2:3, :]          # zt_s logits

    # L_t : BCEWithLogitsLoss(zt_y, target) = softplus(x) - x*y
    lt_part = jnp.sum(_softplus(x) - x * y) * c_t
    # Loss_e : sigmoid entropy = z*sigmoid(z) - softplus(z)   (exact identity)
    we_part = jnp.sum(z * jax.nn.sigmoid(z) - _softplus(z)) * c_e

    # orthogonal-prior KLD (orth_ver=1: flags '10' / '01'), agg='mean'
    t_mu = t_mu_ref[...]
    s_mu = s_mu_ref[...]
    t_lv = t_lvar_ref[...]
    s_lv = s_lvar_ref[...]
    half = t_mu.shape[1] // 2
    first_half = jax.lax.broadcasted_iota(jnp.int32, t_mu.shape, 1) < half
    mdt = jnp.where(first_half, t_mu - 1.0, t_mu)      # t_mu - mask('10')
    mds = jnp.where(first_half, s_mu, s_mu - 1.0)      # s_mu - mask('01')
    kld_sum = (jnp.sum(1.0 + t_lv - jnp.exp(t_lv) - mdt * mdt) +
               jnp.sum(1.0 + s_lv - jnp.exp(s_lv) - mds * mds))
    wod_part = kld_sum * c_od

    tot_part = lt_part + we_part + wod_part

    out_ref[0] += tot_part
    out_ref[1] += lt_part
    out_ref[2] += we_part
    out_ref[3] += wod_part


def _criterion_pallas(scal, logits, t_mu, s_mu, t_lvar, s_lvar, tile_b):
    B, D = t_mu.shape
    n_tiles = B // tile_b
    return pl.pallas_call(
        _criterion_kernel,
        out_shape=jax.ShapeDtypeStruct((4,), jnp.float32),
        grid_spec=pltpu.PrefetchScalarGridSpec(
            num_scalar_prefetch=0,
            grid=(n_tiles,),
            in_specs=[
                pl.BlockSpec(memory_space=pltpu.MemorySpace.SMEM),   # coefficients (3,)
                pl.BlockSpec((3, tile_b), lambda i: (0, i)),         # packed logits
                pl.BlockSpec((tile_b, D), lambda i: (i, 0)),         # t_mu
                pl.BlockSpec((tile_b, D), lambda i: (i, 0)),         # s_mu
                pl.BlockSpec((tile_b, D), lambda i: (i, 0)),         # t_lvar
                pl.BlockSpec((tile_b, D), lambda i: (i, 0)),         # s_lvar
            ],
            out_specs=pl.BlockSpec(memory_space=pltpu.MemorySpace.SMEM),
        ),
        compiler_params=pltpu.CompilerParams(
            dimension_semantics=("arbitrary",)),      # batch axis is a reduction
    )(scal, logits, t_mu, s_mu, t_lvar, s_lvar)


class Args:
    data_name = 'adult'
    kld_agg = 'mean'
    orthogonal_prior = True
    orth_ver = 1
    lambda_e = 1.0
    lambda_od = 0.036
    gamma_e = 2.0
    gamma_od = 1.1
    step_size = 1000.0


def criterion_forward(args, inputs, target, current_step):
    # inputs mirrors the PyTorch module: inputs[1]=(t_mu,s_mu,t_lvar,s_lvar),
    # inputs[2]=(zs_s, zt_y, zt_s).  zs_s is unused in the forward pass.
    t_mu, s_mu, t_lvar, s_lvar = inputs[1]
    zs_s, zt_y, zt_s = inputs[2]
    del zs_s

    B, D = t_mu.shape

    # lambda schedule (plain python scalars, identical to the torch module)
    lam_e = args.lambda_e * args.gamma_e ** (current_step / args.step_size)
    lam_od = args.lambda_od * args.gamma_od ** (current_step / args.step_size)

    # precombined coefficients so the kernel emits the weighted losses directly
    scal = jnp.array([1.0 / B,
                      0.5 * lam_e / B,
                      -0.5 * lam_od / (B * D)], dtype=jnp.float32)

    # pack the three (B, 1) vectors lane-dense as rows of one (3, B) array
    logits = jnp.stack(
        [zt_y.reshape(B), target.reshape(B), zt_s.reshape(B)], axis=0
    ).astype(jnp.float32)

    # batch tiling: whole batch for small B, 512-row tiles for production sizes
    tile_b = B if B <= 512 else 512
    assert B % tile_b == 0, "batch must be divisible by the batch tile"

    out = _criterion_pallas(scal, logits, t_mu, s_mu, t_lvar, s_lvar, tile_b)
    # (tot, L_t, lambda_e * Loss_e, lambda_od * (L_zt + L_zs))
    return out[0], out[1], out[2], out[3]


def _reference(args, inputs, target, current_step):
    # pure-JAX reference matching the PyTorch module (eps'd entropy as in torch code)
    t_mu, s_mu, t_lvar, s_lvar = inputs[1]
    _, zt_y, zt_s = inputs[2]
    bce = jnp.maximum(zt_y, 0.0) - zt_y * target + jnp.log1p(jnp.exp(-jnp.abs(zt_y)))
    l_t = jnp.mean(bce)
    p = jax.nn.sigmoid(zt_s)
    ent = p * jnp.log(p + 1e-9) + (1 - p) * jnp.log(1 - p + 1e-9)
    l_e = jnp.mean(ent / 2.0)
    d = t_mu.shape[1]
    mask_t = jnp.concatenate([jnp.ones((t_mu.shape[0], d // 2)),
                              jnp.zeros((t_mu.shape[0], d - d // 2))], axis=1)
    mask_s = 1.0 - mask_t
    l_zt = -0.5 * jnp.mean(1 + t_lvar - jnp.exp(t_lvar) - (t_mu - mask_t) ** 2)
    l_zs = -0.5 * jnp.mean(1 + s_lvar - jnp.exp(s_lvar) - (s_mu - mask_s) ** 2)
    lam_e = args.lambda_e * args.gamma_e ** (current_step / args.step_size)
    lam_od = args.lambda_od * args.gamma_od ** (current_step / args.step_size)
    tot = l_t + lam_e * l_e + lam_od * (l_zt + l_zs)
    return tot, l_t, lam_e * l_e, lam_od * (l_zt + l_zs)


if __name__ == "__main__":
    args = Args()
    B, D = 8, 32
    key = jax.random.PRNGKey(0)
    ks = jax.random.split(key, 8)

    t_mu = jax.random.normal(ks[0], (B, D), jnp.float32)
    s_mu = jax.random.normal(ks[1], (B, D), jnp.float32)
    t_lvar = 0.1 * jax.random.normal(ks[2], (B, D), jnp.float32)
    s_lvar = 0.1 * jax.random.normal(ks[3], (B, D), jnp.float32)
    zs_s = jax.random.normal(ks[4], (B, 1), jnp.float32)
    zt_y = jax.random.normal(ks[5], (B, 1), jnp.float32)
    zt_s = jax.random.normal(ks[6], (B, 1), jnp.float32)
    target = (jax.random.uniform(ks[7], (B, 1)) > 0.5).astype(jnp.float32)

    inputs = (None, (t_mu, s_mu, t_lvar, s_lvar), (zs_s, zt_y, zt_s))
    current_step = 100.0

    out = criterion_forward(args, inputs, target, current_step)
    out = jax.block_until_ready(out)

    ref = _reference(args, inputs, target, current_step)
    for a, b in zip(out, ref):
        assert jnp.allclose(a, b, rtol=1e-5, atol=1e-5), (a, b)

    print("KERNEL_OK")
</pallas_src>

<mosaic_0001>
module attributes {stable_mosaic.version = 11 : i64} {
  func.func @_criterion_kernel(%arg0: i32, %arg1: memref<3xf32, #tpu.memory_space<smem>>, %arg2: memref<3x8xf32, #tpu.memory_space<vmem>>, %arg3: memref<8x32xf32, #tpu.memory_space<vmem>>, %arg4: memref<8x32xf32, #tpu.memory_space<vmem>>, %arg5: memref<8x32xf32, #tpu.memory_space<vmem>>, %arg6: memref<8x32xf32, #tpu.memory_space<vmem>>, %arg7: memref<4xf32, #tpu.memory_space<smem>>) attributes {dimension_semantics = [#tpu.dimension_semantics<arbitrary>], iteration_bounds = array<i64: 1>, scalar_prefetch = 0 : i64, scratch_operands = 0 : i64, tpu.core_type = #tpu.core_type<tc>, window_params = [{transform_indices = @transform_0, window_bounds = array<i64: 3>}, {transform_indices = @transform_1, window_bounds = array<i64: 3, 8>}, {transform_indices = @transform_2, window_bounds = array<i64: 8, 32>}, {transform_indices = @transform_3, window_bounds = array<i64: 8, 32>}, {transform_indices = @transform_4, window_bounds = array<i64: 8, 32>}, {transform_indices = @transform_5, window_bounds = array<i64: 8, 32>}, {transform_indices = @transform_6, window_bounds = array<i64: 4>}]} {
    %c0_i32 = arith.constant 0 : i32
    %0 = arith.cmpi eq, %arg0, %c0_i32 : i32
    %1 = arith.extui %0 : i1 to i32
    %c0_i32_0 = arith.constant 0 : i32
    %2 = arith.cmpi ne, %1, %c0_i32_0 : i32
    scf.if %2 {
      %cst_34 = arith.constant 0.000000e+00 : f32
      %c0_35 = arith.constant 0 : index
      %93 = memref.load %arg7[%c0_35] : memref<4xf32, #tpu.memory_space<smem>>
      memref.store %cst_34, %arg7[%c0_35] : memref<4xf32, #tpu.memory_space<smem>>
      %cst_36 = arith.constant 0.000000e+00 : f32
      %c1_37 = arith.constant 1 : index
      %94 = memref.load %arg7[%c1_37] : memref<4xf32, #tpu.memory_space<smem>>
      memref.store %cst_36, %arg7[%c1_37] : memref<4xf32, #tpu.memory_space<smem>>
      %cst_38 = arith.constant 0.000000e+00 : f32
      %c2_39 = arith.constant 2 : index
      %95 = memref.load %arg7[%c2_39] : memref<4xf32, #tpu.memory_space<smem>>
      memref.store %cst_38, %arg7[%c2_39] : memref<4xf32, #tpu.memory_space<smem>>
      %cst_40 = arith.constant 0.000000e+00 : f32
      %c3_41 = arith.constant 3 : index
      %96 = memref.load %arg7[%c3_41] : memref<4xf32, #tpu.memory_space<smem>>
      memref.store %cst_40, %arg7[%c3_41] : memref<4xf32, #tpu.memory_space<smem>>
    } else {
    }
    %c0 = arith.constant 0 : index
    %3 = memref.load %arg1[%c0] : memref<3xf32, #tpu.memory_space<smem>>
    %c1 = arith.constant 1 : index
    %4 = memref.load %arg1[%c1] : memref<3xf32, #tpu.memory_space<smem>>
    %c2 = arith.constant 2 : index
    %5 = memref.load %arg1[%c2] : memref<3xf32, #tpu.memory_space<smem>>
    %c0_1 = arith.constant 0 : index
    %c0_2 = arith.constant 0 : index
    %6 = vector.load %arg2[%c0_1, %c0_2] : memref<3x8xf32, #tpu.memory_space<vmem>>, vector<1x8xf32>
    %c1_3 = arith.constant 1 : index
    %c0_4 = arith.constant 0 : index
    %7 = vector.load %arg2[%c1_3, %c0_4] : memref<3x8xf32, #tpu.memory_space<vmem>>, vector<1x8xf32>
    %c2_5 = arith.constant 2 : index
    %c0_6 = arith.constant 0 : index
    %8 = vector.load %arg2[%c2_5, %c0_6] : memref<3x8xf32, #tpu.memory_space<vmem>>, vector<1x8xf32>
    %cst = arith.constant 0.000000e+00 : f32
    %9 = vector.broadcast %cst : f32 to vector<1x8xf32>
    %10 = arith.maximumf %6, %9 : vector<1x8xf32>
    %11 = math.absf %6 : vector<1x8xf32>
    %cst_7 = arith.constant 0.000000e+00 : f32
    %12 = vector.broadcast %cst_7 : f32 to vector<1x8xf32>
    %13 = arith.subf %12, %11 : vector<1x8xf32>
    %14 = math.exp %13 : vector<1x8xf32>
    %15 = math.log1p %14 : vector<1x8xf32>
    %16 = arith.addf %10, %15 : vector<1x8xf32>
    %17 = arith.mulf %6, %7 : vector<1x8xf32>
    %18 = arith.subf %16, %17 : vector<1x8xf32>
    %19 = vector.shape_cast %18 : vector<1x8xf32> to vector<1x1x8xf32>
    %cst_8 = arith.constant dense<0.000000e+00> : vector<1xf32>
    %20 = vector.multi_reduction <add>, %19, %cst_8 [1, 2] : vector<1x1x8xf32> to vector<1xf32>
    %21 = vector.shape_cast %20 : vector<1xf32> to vector<1x1x1xf32>
    %22 = vector.extract %21[0, 0, 0] : f32 from vector<1x1x1xf32>
    %23 = arith.mulf %22, %3 : f32
    %24 = arith.negf %8 : vector<1x8xf32>
    %25 = math.exp %24 : vector<1x8xf32>
    %cst_9 = arith.constant 1.000000e+00 : f32
    %26 = vector.broadcast %cst_9 : f32 to vector<1x8xf32>
    %27 = arith.addf %26, %25 : vector<1x8xf32>
    %28 = arith.divf %26, %27 : vector<1x8xf32>
    %29 = arith.mulf %8, %28 : vector<1x8xf32>
    %cst_10 = arith.constant 0.000000e+00 : f32
    %30 = vector.broadcast %cst_10 : f32 to vector<1x8xf32>
    %31 = arith.maximumf %8, %30 : vector<1x8xf32>
    %32 = math.absf %8 : vector<1x8xf32>
    %cst_11 = arith.constant 0.000000e+00 : f32
    %33 = vector.broadcast %cst_11 : f32 to vector<1x8xf32>
    %34 = arith.subf %33, %32 : vector<1x8xf32>
    %35 = math.exp %34 : vector<1x8xf32>
    %36 = math.log1p %35 : vector<1x8xf32>
    %37 = arith.addf %31, %36 : vector<1x8xf32>
    %38 = arith.subf %29, %37 : vector<1x8xf32>
    %39 = vector.shape_cast %38 : vector<1x8xf32> to vector<1x1x8xf32>
    %cst_12 = arith.constant dense<0.000000e+00> : vector<1xf32>
    %40 = vector.multi_reduction <add>, %39, %cst_12 [1, 2] : vector<1x1x8xf32> to vector<1xf32>
    %41 = vector.shape_cast %40 : vector<1xf32> to vector<1x1x1xf32>
    %42 = vector.extract %41[0, 0, 0] : f32 from vector<1x1x1xf32>
    %43 = arith.mulf %42, %4 : f32
    %c0_13 = arith.constant 0 : index
    %c0_14 = arith.constant 0 : index
    %44 = vector.load %arg3[%c0_13, %c0_14] : memref<8x32xf32, #tpu.memory_space<vmem>>, vector<8x32xf32>
    %c0_15 = arith.constant 0 : index
    %c0_16 = arith.constant 0 : index
    %45 = vector.load %arg4[%c0_15, %c0_16] : memref<8x32xf32, #tpu.memory_space<vmem>>, vector<8x32xf32>
    %c0_17 = arith.constant 0 : index
    %c0_18 = arith.constant 0 : index
    %46 = vector.load %arg5[%c0_17, %c0_18] : memref<8x32xf32, #tpu.memory_space<vmem>>, vector<8x32xf32>
    %c0_19 = arith.constant 0 : index
    %c0_20 = arith.constant 0 : index
    %47 = vector.load %arg6[%c0_19, %c0_20] : memref<8x32xf32, #tpu.memory_space<vmem>>, vector<8x32xf32>
    %48 = tpu.iota {dimensions = array<i32: 1>} : vector<8x32xi32>
    %c16_i32 = arith.constant 16 : i32
    %49 = vector.broadcast %c16_i32 : i32 to vector<8x32xi32>
    %50 = arith.cmpi slt, %48, %49 : vector<8x32xi32>
    %cst_21 = arith.constant 1.000000e+00 : f32
    %51 = vector.broadcast %cst_21 : f32 to vector<8x32xf32>
    %52 = arith.subf %44, %51 : vector<8x32xf32>
    %53 = arith.select %50, %52, %44 : vector<8x32xi1>, vector<8x32xf32>
    %cst_22 = arith.constant 1.000000e+00 : f32
    %54 = vector.broadcast %cst_22 : f32 to vector<8x32xf32>
    %55 = arith.subf %45, %54 : vector<8x32xf32>
    %56 = arith.select %50, %45, %55 : vector<8x32xi1>, vector<8x32xf32>
    %cst_23 = arith.constant 1.000000e+00 : f32
    %57 = vector.broadcast %cst_23 : f32 to vector<8x32xf32>
    %58 = arith.addf %57, %46 : vector<8x32xf32>
    %59 = math.exp %46 : vector<8x32xf32>
    %60 = arith.subf %58, %59 : vector<8x32xf32>
    %61 = arith.mulf %53, %53 : vector<8x32xf32>
    %62 = arith.subf %60, %61 : vector<8x32xf32>
    %63 = vector.shape_cast %62 : vector<8x32xf32> to vector<1x8x32xf32>
    %cst_24 = arith.constant dense<0.000000e+00> : vector<1xf32>
    %64 = vector.multi_reduction <add>, %63, %cst_24 [1, 2] : vector<1x8x32xf32> to vector<1xf32>
    %65 = vector.shape_cast %64 : vector<1xf32> to vector<1x1x1xf32>
    %66 = vector.extract %65[0, 0, 0] : f32 from vector<1x1x1xf32>
    %cst_25 = arith.constant 1.000000e+00 : f32
    %67 = vector.broadcast %cst_25 : f32 to vector<8x32xf32>
    %68 = arith.addf %67, %47 : vector<8x32xf32>
    %69 = math.exp %47 : vector<8x32xf32>
    %70 = arith.subf %68, %69 : vector<8x32xf32>
    %71 = arith.mulf %56, %56 : vector<8x32xf32>
    %72 = arith.subf %70, %71 : vector<8x32xf32>
    %73 = vector.shape_cast %72 : vector<8x32xf32> to vector<1x8x32xf32>
    %cst_26 = arith.constant dense<0.000000e+00> : vector<1xf32>
    %74 = vector.multi_reduction <add>, %73, %cst_26 [1, 2] : vector<1x8x32xf32> to vector<1xf32>
    %75 = vector.shape_cast %74 : vector<1xf32> to vector<1x1x1xf32>
    %76 = vector.extract %75[0, 0, 0] : f32 from vector<1x1x1xf32>
    %77 = arith.addf %66, %76 : f32
    %78 = arith.mulf %77, %5 : f32
    %79 = arith.addf %23, %43 : f32
    %80 = arith.addf %79, %78 : f32
    %c0_27 = arith.constant 0 : index
    %81 = memref.load %arg7[%c0_27] : memref<4xf32, #tpu.memory_space<smem>>
    %82 = arith.addf %81, %80 : f32
    %c0_28 = arith.constant 0 : index
    %83 = memref.load %arg7[%c0_28] : memref<4xf32, #tpu.memory_space<smem>>
    memref.store %82, %arg7[%c0_28] : memref<4xf32, #tpu.memory_space<smem>>
    %c1_29 = arith.constant 1 : index
    %84 = memref.load %arg7[%c1_29] : memref<4xf32, #tpu.memory_space<smem>>
    %85 = arith.addf %84, %23 : f32
    %c1_30 = arith.constant 1 : index
    %86 = memref.load %arg7[%c1_30] : memref<4xf32, #tpu.memory_space<smem>>
    memref.store %85, %arg7[%c1_30] : memref<4xf32, #tpu.memory_space<smem>>
    %c2_31 = arith.constant 2 : index
    %87 = memref.load %arg7[%c2_31] : memref<4xf32, #tpu.memory_space<smem>>
    %88 = arith.addf %87, %43 : f32
    %c2_32 = arith.constant 2 : index
    %89 = memref.load %arg7[%c2_32] : memref<4xf32, #tpu.memory_space<smem>>
    memref.store %88, %arg7[%c2_32] : memref<4xf32, #tpu.memory_space<smem>>
    %c3 = arith.constant 3 : index
    %90 = memref.load %arg7[%c3] : memref<4xf32, #tpu.memory_space<smem>>
    %91 = arith.addf %90, %78 : f32
    %c3_33 = arith.constant 3 : index
    %92 = memref.load %arg7[%c3_33] : memref<4xf32, #tpu.memory_space<smem>>
    memref.store %91, %arg7[%c3_33] : memref<4xf32, #tpu.memory_space<smem>>
    return
  }
  func.func @transform_0(%arg0: i32) -> i32 {
    %c0_i32 = arith.constant 0 : i32
    %c0_i32_0 = arith.constant 0 : i32
    return %c0_i32 : i32
  }
  func.func @transform_1(%arg0: i32) -> (i32, i32) {
    %c0_i32 = arith.constant 0 : i32
    %c0_i32_0 = arith.constant 0 : i32
    return %c0_i32, %arg0 : i32, i32
  }
  func.func @transform_2(%arg0: i32) -> (i32, i32) {
    %c0_i32 = arith.constant 0 : i32
    %c0_i32_0 = arith.constant 0 : i32
    return %arg0, %c0_i32 : i32, i32
  }
  func.func @transform_3(%arg0: i32) -> (i32, i32) {
    %c0_i32 = arith.constant 0 : i32
    %c0_i32_0 = arith.constant 0 : i32
    return %arg0, %c0_i32 : i32, i32
  }
  func.func @transform_4(%arg0: i32) -> (i32, i32) {
    %c0_i32 = arith.constant 0 : i32
    %c0_i32_0 = arith.constant 0 : i32
    return %arg0, %c0_i32 : i32, i32
  }
  func.func @transform_5(%arg0: i32) -> (i32, i32) {
    %c0_i32 = arith.constant 0 : i32
    %c0_i32_0 = arith.constant 0 : i32
    return %arg0, %c0_i32 : i32, i32
  }
  func.func @transform_6(%arg0: i32) -> i32 {
    %c0_i32 = arith.constant 0 : i32
    %c0_i32_0 = arith.constant 0 : i32
    return %c0_i32 : i32
  }
}

</mosaic_0001>

<bundles_post_ra>
// kernel: tpu_custom_call.1
= control target key start
LH: loop header
LB: loop body
LE: loop exit
PB: predicated region body
PF: predicated region fallthrough
CT: control target
= control target key end

     0   :  { %11 = vsyncpa [#allocation4], 0  ;;  %s462_s0 = inlined_call_operand.hbm [shape: f32[3], index: 0, kind: input, shape index: {}]   ;;  %s463_s1 = inlined_call_operand.hbm [shape: f32[3,8], index: 1, kind: input, shape index: {}]   ;;  %s464_s2 = inlined_call_operand.hbm [shape: f32[8,32], index: 2, kind: input, shape index: {}]   ;;  %s465_s3 = inlined_call_operand.hbm [shape: f32[8,32], index: 3, kind: input, shape index: {}]   ;;  %s466_s4 = inlined_call_operand.hbm [shape: f32[8,32], index: 4, kind: input, shape index: {}]   ;;  %s467_s5 = inlined_call_operand.vmem [shape: f32[8,32], index: 5, kind: input, shape index: {}]   ;;  %s468_s6 = inlined_call_operand.hbm [shape: f32[4], index: 6, kind: output, shape index: {}]  }
   0x1   :  { %12 = vsyncpa [#allocation3], 0 }
   0x2   :  { %13 = vsyncpa [#allocation8], 0 }
   0x3   :  { %14 = vsyncpa [#allocation11], 0 }
   0x4   :  { %15 = vsyncpa [#allocation5], 0  ;;  %s389_s21 = smov [#allocation7]   ;;  %s390_s23 = smov [#allocation6]  }
   0x5   :  { %s40_s22 = sshll.u32 %s389_s21, 4  ;;  %s30_s24 = sshll.u32 %s390_s23, 4  ;;  %s41_s22 = int_to_ptr.vmem [resolvable:$true] %s40_s22  ;;  %s31_s24 = int_to_ptr.vmem [resolvable:$true] %s30_s24 }
   0x6   :  { %s291_s25 = scalar_lea.vmem %s41_s22, 128  ;;  %p296_p1 = scmp.lt.s32.totalorder %s41_s22, %s41_s22 }
   0x7   :  { %p292_p0 = scmp.ne.s32.totalorder %s41_s22, %s291_s25  ;;  %p297_p2 = scmp.lt.s32.totalorder %s291_s25, %s291_s25 }
   0x9   :  { %p298_p3 = por %p297_p2, %p296_p1 }
   0xb   :  { %p299_p4 = pnand %p298_p3, %p292_p0 }
   0xd   :  { %302 = shalt.err (!%p299_p4)
}
   0xe   :  { %43 = dma.hbm_to_vmem [thread:$0]  %s464_s2, 128, %s41_s22, [#allocation8]  }
   0xf   :  { %s391_s28 = smov [#allocation2]   ;;  %s319_s7 = scalar_lea.vmem %s31_s24, 64 }
  0x10   :  { %23 = dma.hbm_to_smem %s462_s0, 16, %s391_s28, [#allocation4]  }
  0x11   :  { %p320_p5 = scmp.ne.s32.totalorder %s31_s24, %s319_s7  ;;  %p324_p6 = scmp.lt.s32.totalorder %s31_s24, %s31_s24 }
  0x12   :  { %p325_p7 = scmp.lt.s32.totalorder %s319_s7, %s319_s7 }
  0x14   :  { %p326_p8 = por %p325_p7, %p324_p6 }
  0x16   :  { %p327_p9 = pnand %p326_p8, %p320_p5 }
  0x18   :  { %330 = shalt.err (!%p327_p9)
}
  0x19   :  { %33 = dma.hbm_to_vmem [thread:$0]  %s463_s1, 64, %s31_s24, [#allocation3]  }
  0x1a   :  { %s392_s10 = smov [#allocation9]   ;;  %s393_s2 = smov [#allocation10]  }
  0x1b   :  { %s50_s11 = sshll.u32 %s392_s10, 4  ;;  %s60_s12 = sshll.u32 %s393_s2, 4  ;;  %s51_s11 = int_to_ptr.vmem [resolvable:$true] %s50_s11  ;;  %s61_s12 = int_to_ptr.vmem [resolvable:$true] %s60_s12 }
  0x1c   :  { %s339_s13 = scalar_lea.vmem %s51_s11, 128  ;;  %p344_p11 = scmp.lt.s32.totalorder %s51_s11, %s51_s11 }
  0x1d   :  { %p340_p10 = scmp.ne.s32.totalorder %s51_s11, %s339_s13  ;;  %p345_p12 = scmp.lt.s32.totalorder %s339_s13, %s339_s13 }
  0x1f   :  { %p346_p13 = por %p345_p12, %p344_p11 }
  0x21   :  { %p347_p0 = pnand %p346_p13, %p340_p10 }
  0x23   :  { %350 = shalt.err (!%p347_p0)
}
  0x24   :  { %53 = dma.hbm_to_vmem [thread:$0]  %s465_s3, 128, %s51_s11, [#allocation8]  }
  0x25   :  { %s359_s15 = scalar_lea.vmem %s61_s12, 128  ;;  %p364_p2 = scmp.lt.s32.totalorder %s61_s12, %s61_s12 }
  0x26   :  { %p360_p1 = scmp.ne.s32.totalorder %s61_s12, %s359_s15  ;;  %p365_p3 = scmp.lt.s32.totalorder %s359_s15, %s359_s15 }
  0x28   :  { %p366_p4 = por %p365_p3, %p364_p2 }
  0x2a   :  { %p367_p5 = pnand %p366_p4, %p360_p1 }
  0x2c   :  { %370 = shalt.err (!%p367_p5)
}
  0x2d   :  { %63 = dma.hbm_to_vmem [thread:$0]  %s466_s4, 128, %s61_s12, [#allocation11]  }
  0x2e   :  { %379 = dma.done.wait [#allocation4], 16  }
  0x2f   :  { %380 = vsyncadd [#allocation4], 4294967280 }
  0x30   :  { %381 = dma.done.wait [#allocation3], 64  }
  0x31   :  { %382 = vsyncadd [#allocation3], 4294967232 }
  0x32   :  { %383 = dma.done.wait [#allocation8], 256  }
  0x33   :  { %384 = vsyncadd [#allocation8], 4294967040 }
  0x34   :  { %385 = dma.done.wait [#allocation11], 128  }
  0x35   :  { %386 = vsyncadd [#allocation11], 4294967168 }
  0x36   :  { %81 = sfence }
  0x37   :  { %v165_v0 = vld [vmem:[#allocation10] sm:$0xff]  ;;  %v167_v1 = vlaneseq  ;;  %v166_v3 = vld [vmem:[%s467_s5] sm:$0xff]  ;;  %v164_v12 = vld [vmem:[#allocation9] sm:$0xff]  ;;  %vm180_vm1 = vcmask 261120   ;;  %vm117_vm4 = vcmask 57344   ;;  %s94_s4 = sld [smem:[#allocation2]] }
  0x38   :  { %v175_v2 = vmul.f32 1.442695, %v165_v0  ;;  %v192_v4 = vmul.f32 1.442695, %v166_v3  ;;  %v448_v5 = vld [vmem:[#allocation6] sm:$0x1] }
  0x39   :  { %v101_v6 = vand.u32 2147483647, %v448_v5  ;;  %v451_v7 = vld [vmem:[#allocation6 + $0x2] sm:$0x1]  ;;  %v163_v8 = vld [vmem:[#allocation7] sm:$0xff]  ;;  %v168_v9 = vand.u32 127, %v167_v1 }
  0x3a   :  { %267 = vpow2.f32 %v175_v2  ;;  %v246_v11 = vmul.f32 -1.442695, %v451_v7  ;;  %v137_v13 = vand.u32 2147483647, %v451_v7  ;;  %v247_v15 = vadd.f32 -1.0, %v163_v8  ;;  %s244_s5 = sld [smem:[#allocation2 + $0x1]] }
  0x3b   :  { %269 = vpow2.f32 %v192_v4  ;;  %v102_v10 = vsub.f32 0.0, %v101_v6  ;;  %vm169_vm0 = vcmp.lt.s32.totalorder %v168_v9, 16  ;;  %v248_v17 = vadd.f32 -1.0, %v164_v12  ;;  %v98_v44 = vld [vmem:[#allocation6 + $0x1] sm:$0x1]  ;;  %s245_s20 = sld [smem:[#allocation2 + $0x2]] }
  0x3c   :  { %271 = vpow2.f32 %v246_v11  ;;  %v138_v16 = vsub.f32 0.0, %v137_v13  ;;  %v171_v19 = vsel %vm169_vm0, %v247_v15, %v163_v8  ;;  %v174_v20 = vadd.f32 1.0, %v165_v0  ;;  %s394_s29 = smov [#allocation12]  }
  0x3d   :  { %v103_v14 = vmul.f32 1.442695, %v102_v10  ;;  %v173_v21 = vsel %vm169_vm0, %v164_v12, %v248_v17  ;;  %v191_v22 = vadd.f32 1.0, %v166_v3  ;;  %v178_v23 = vmul.f32 %v171_v19, %v171_v19 }
  0x3e   :  { %v139_v18 = vmul.f32 1.442695, %v138_v16  ;;  %v195_v25 = vmul.f32 %v173_v21, %v173_v21  ;;  %v100_v48 = vmax.f32 %v448_v5, 0.0  ;;  %v115_v51 = vmul.f32 %v98_v44, %v448_v5 }
  0x3f   :  { %273 = vpow2.f32 %v103_v14  ;;  %v136_v55 = vmax.f32 %v451_v7, 0.0 }
  0x40   :  { %275 = vpow2.f32 %v139_v18 }
  0x47   :  { %v268_v24 = vpop.eup %267 }
  0x48   :  { %v270_v26 = vpop.eup %269  ;;  %v177_v27 = vsub.f32 %v174_v20, %v268_v24 }
  0x49   :  { %v194_v28 = vsub.f32 %v191_v22, %v270_v26  ;;  %v272_v30 = vpop.eup %271 }
  0x4a   :  { %v179_v29 = vsub.f32 %v177_v27, %v178_v23  ;;  %v132_v36 = vadd.f32 1.0, %v272_v30 }
  0x4b   :  { %v196_v31 = vsub.f32 %v194_v28, %v195_v25 }
  0x4c   :  { %v181_v32 = vsel %vm180_vm1, %v179_v29, 0.0  ;;  %v274_v33 = vpop.eup %273 }
  0x4d   :  { %182 = vadd.xlane.f32.xlu1 %v181_v32  ;;  %v197_v34 = vsel %vm180_vm1, %v196_v31, 0.0  ;;  %v105_v35 = vadd.f32 1.0, %v274_v33  ;;  %v276_v37 = vpop.eup %275  ;;  %v108_v39 = vmul.f32 -0.5, %v274_v33  ;;  %v111_v42 = vand.u32 2147483647, %v274_v33 }
  0x4e   :  { %v141_v38 = vadd.f32 1.0, %v276_v37  ;;  %v144_v40 = vmul.f32 -0.5, %v276_v37  ;;  %v147_v46 = vand.u32 2147483647, %v276_v37 }
  0x4f   :  { %277 = vlog2.f32 %v105_v35  ;;  %v109_v41 = vadd.f32 1.0, %v108_v39  ;;  %vm112_vm2 = vcmp.lt.f32.partialorder %v111_v42, 0.0004427343 }
  0x50   :  { %279 = vrcp.f32 %v132_v36  ;;  %v145_v43 = vadd.f32 1.0, %v144_v40  ;;  %vm148_vm3 = vcmp.lt.f32.partialorder %v147_v46, 0.0004427343 }
  0x51   :  { %198 = vadd.xlane.f32.xlu1 %v197_v34  ;;  %281 = vlog2.f32 %v141_v38  ;;  %v110_v45 = vmul.f32 %v274_v33, %v109_v41 }
  0x52   :  { %v146_v52 = vmul.f32 %v276_v37, %v145_v43 }
  0x5c   :  { %v278_v47 = vpop.eup %277 }
  0x5d   :  { %v107_v49 = vmul.f32 0.6931472, %v278_v47  ;;  %v280_v50 = vpop.eup %279 }
  0x5e   :  { %v282_v53 = vpop.eup %281  ;;  %v135_v58 = vmul.f32 %v280_v50, %v451_v7 }
  0x5f   :  { %v113_v54 = vsel %vm112_vm2, %v110_v45, %v107_v49  ;;  %v143_v57 = vmul.f32 0.6931472, %v282_v53 }
  0x60   :  { %v114_v56 = vadd.f32 %v113_v54, %v100_v48 }
  0x61   :  { %v149_v60 = vsel %vm148_vm3, %v146_v52, %v143_v57 }
  0x62   :  { %v116_v59 = vsub.f32 %v114_v56, %v115_v51  ;;  %v150_v61 = vadd.f32 %v149_v60, %v136_v55 }
  0x64   :  { %v118_v62 = vsel %vm117_vm4, %v116_v59, 0.0  ;;  %v151_v63 = vsub.f32 %v135_v58, %v150_v61 }
  0x65   :  { %119 = vadd.xlane.f32.xlu0 %v118_v62 }
  0x66   :  { %v152_v0 = vsel %vm117_vm4, %v151_v63, 0.0 }
  0x69   :  { %153 = vadd.xlane.f32.xlu0 %v152_v0 }
  0xd6   :  { %v183_v1 = vpop.xlane.xlu1 %182 }
  0xd7   :  { %v184_v3 = vrot.slane %v183_v1, 4 }
  0xd9   :  { %v185_v5 = vadd.f32 %v184_v3, %v183_v1 }
  0xda   :  { %v199_v2 = vpop.xlane.xlu1 %198 }
  0xdb   :  { %v200_v4 = vrot.slane %v199_v2, 4  ;;  %v186_v11 = vrot.slane %v185_v5, 2 }
  0xdd   :  { %v201_v8 = vadd.f32 %v200_v4, %v199_v2  ;;  %v187_v17 = vadd.f32 %v186_v11, %v185_v5 }
  0xdf   :  { %v202_v7 = vrot.slane %v201_v8, 2  ;;  %v188_v23 = vrot.slane %v187_v17, 1 }
  0xe1   :  { %v203_v18 = vadd.f32 %v202_v7, %v201_v8  ;;  %v189_v27 = vadd.f32 %v188_v23, %v187_v17 }
  0xe3   :  { %v204_v25 = vrot.slane %v203_v18, 1 }
  0xe5   :  { %v205_v28 = vadd.f32 %v204_v25, %v203_v18 }
  0xee   :  { %v120_v6 = vpop.xlane.xlu0 %119 }
  0xef   :  { %v121_v9 = vrot.slane %v120_v6, 4 }
  0xf1   :  { %v122_v10 = vadd.f32 %v121_v9, %v120_v6 }
  0xf2   :  { %v154_v12 = vpop.xlane.xlu0 %153 }
  0xf3   :  { %v123_v13 = vrot.slane %v122_v10, 2  ;;  %v155_v14 = vrot.slane %v154_v12, 4 }
  0xf5   :  { %v156_v15 = vadd.f32 %v155_v14, %v154_v12  ;;  %v124_v16 = vadd.f32 %v123_v13, %v122_v10 }
  0xf7   :  { %v157_v19 = vrot.slane %v156_v15, 2  ;;  %v125_v20 = vrot.slane %v124_v16, 1 }
  0xf9   :  { %v158_v21 = vadd.f32 %v157_v19, %v156_v15  ;;  %v126_v22 = vadd.f32 %v125_v20, %v124_v16 }
  0xfb   :  { %252 = vpush %v126_v22  ;;  %v159_v24 = vrot.slane %v158_v21, 1 }
  0xfd   :  { %v160_v26 = vadd.f32 %v159_v24, %v158_v21 }
  0xff   :  { %254 = vpush %v160_v26 }
 0x100   :  { %256 = vpush %v189_v27 }
 0x101   :  { %258 = vpush %v205_v28 }
 0x12c   :  { %s253_s18 = spop %252 }
 0x12d   :  { %s128_s19 = smul.f32 %s253_s18, %s94_s4 }
 0x12f   :  { %218 = sst [smem:[#allocation12 + $0x1]] %s128_s19 }
 0x130   :  { %s255_s21 = spop %254 }
 0x131   :  { %s162_s22 = smul.f32 %s255_s21, %s244_s5  ;;  %s257_s23 = spop %256 }
 0x132   :  { %s259_s24 = spop %258 }
 0x133   :  { %s209_s25 = sadd.f32 %s162_s22, %s128_s19 }
 0x134   :  { %s207_s26 = sadd.f32 %s259_s24, %s257_s23 }
 0x135   :  { %222 = sst [smem:[#allocation12 + $0x2]] %s162_s22 }
 0x136   :  { %s208_s27 = smul.f32 %s245_s20, %s207_s26 }
 0x138   :  { %s210_s28 = sadd.f32 %s209_s25, %s208_s27 }
 0x139   :  { %226 = sst [smem:[#allocation12 + $0x3]] %s208_s27 }
 0x13a   :  { %214 = sst [smem:[#allocation12]] %s210_s28 }
 0x13b   :  { %234 = dma.smem_to_hbm %s394_s29, 16, %s468_s6, [#allocation5]  }
 0x13c   :  { %387 = dma.done.wait [#allocation5], 16  }
 0x13d   :  { %388 = vsyncadd [#allocation5], 4294967280 }
 0x13e   :  { %238 = sfence }
 0x13f   :  { %239 = vsyncpa [#allocation3], 1 }
 0x140   :  { %240 = vsyncpa [#allocation8], 1 }
 0x141   :  { %241 = vsyncpa [#allocation11], 1 }
 0x142   :  { %242 = vsyncpa [#allocation4], 1 }
 0x143   :  { %243 = vsyncpa [#allocation5], 1 }

</bundles_post_ra>
